<compile_context>
chip_gen: v7x
topology: tpu7x:2x2x1
jax: 0.10.0
libtpu: 0.0.40
codegen_flags: <defaults>
</compile_context>

<pallas_src>
import jax
import jax.numpy as jnp
from jax import lax
from jax.experimental import pallas as pl
from jax.experimental.pallas import tpu as pltpu


# --------------------------------------------------------------------------------------
# Kernel
# --------------------------------------------------------------------------------------
def _fusion_kernel(d_total, mm_dtype):
    inv_d = 1.0 / float(d_total)

    def kernel(f1_ref, f2_ref, w1a_ref, w1b_ref, b1_ref, w2_ref, b2_ref, o_ref):
        f1 = f1_ref[...].astype(jnp.float32)          # (bm, D1)
        f2 = f2_ref[...].astype(jnp.float32)          # (bm, D2)

        # LayerNorm over the *virtual* concat([f1, f2], -1), never materialised.
        # Single-pass statistics: Sum(x) and Sum(x^2) reductions can overlap on the XLU.
        s = jnp.sum(f1, axis=-1, keepdims=True) + jnp.sum(f2, axis=-1, keepdims=True)
        sq = (jnp.sum(f1 * f1, axis=-1, keepdims=True)
              + jnp.sum(f2 * f2, axis=-1, keepdims=True))
        mu = s * inv_d
        var = jnp.maximum(sq * inv_d - mu * mu, 0.0)
        inv_std = lax.rsqrt(var + 1e-5)
        y1 = ((f1 - mu) * inv_std).astype(mm_dtype)
        y2 = ((f2 - mu) * inv_std).astype(mm_dtype)

        # gamma / beta already folded into w1a / w1b / b1 (offline, in fold_params).
        h = (jnp.dot(y1, w1a_ref[...], preferred_element_type=jnp.float32)
             + jnp.dot(y2, w1b_ref[...], preferred_element_type=jnp.float32)
             + b1_ref[...])
        h = jnp.maximum(h, 0.0)                                   # ReLU
        # TODO(synk): nn.Dropout layers are identity in eval mode and are omitted.

        delta = (jnp.dot(h.astype(mm_dtype), w2_ref[...],
                         preferred_element_type=jnp.float32)
                 + b2_ref[...])

        # Same semantics as the reference's `delta * valid` (float multiply).
        valid = (jnp.sum(jnp.abs(f2), axis=-1, keepdims=True) != 0.0).astype(jnp.float32)
        o_ref[...] = (f1 + delta * valid).astype(o_ref.dtype)

    return kernel


# --------------------------------------------------------------------------------------
# Offline parameter folding (call ONCE per parameter set; hoisted out of the fwd path)
# --------------------------------------------------------------------------------------
def fold_params(params, feat1_dim, *, weight_dtype=jnp.float32, hidden_pad_to=128):
    gamma = params["gamma"].astype(jnp.float32)       # (D,)
    beta = params["beta"].astype(jnp.float32)         # (D,)
    w1 = params["w1"].astype(jnp.float32)             # (D, H)  pre-transposed (in, out)
    b1 = params["b1"].astype(jnp.float32)             # (H,)
    w2 = params["w2"].astype(jnp.float32)             # (H, D1)
    b2 = params["b2"].astype(jnp.float32)             # (D1,)

    D, H = w1.shape
    D1 = feat1_dim
    HP = ((H + hidden_pad_to - 1) // hidden_pad_to) * hidden_pad_to   # lane-dense hidden

    w1_scaled = gamma[:, None] * w1                   # fold LN gamma into W1 rows
    b1_folded = beta @ w1 + b1                        # fold LN beta into b1

    # Zero-pad H -> HP: numerically exact (ReLU(0)=0; zero w2 rows contribute nothing).
    w1p = jnp.zeros((D, HP), jnp.float32).at[:, :H].set(w1_scaled)
    b1p = jnp.zeros((1, HP), jnp.float32).at[:, :H].set(b1_folded[None, :])
    w2p = jnp.zeros((HP, D1), jnp.float32).at[:H, :].set(w2)

    return {
        "w1a": w1p[:D1].astype(weight_dtype),         # (D1, HP)
        "w1b": w1p[D1:].astype(weight_dtype),         # (D2, HP)
        "b1": b1p,                                    # (1, HP), kept f32 (added to f32 acc)
        "w2": w2p.astype(weight_dtype),               # (HP, D1)
        "b2": b2[None, :],                            # (1, D1), f32
        "d_total": D,
    }


# --------------------------------------------------------------------------------------
# Row-block sizing: biggest block that fits a conservative VMEM budget, capped at 1024
# rows (512-1024-row blocks already reach ~85% of HBM roofline for mem-bound kernels),
# rounded to a multiple of 8 for (8, 128) sublane alignment.
# --------------------------------------------------------------------------------------
def _pick_block_m(m, d1, d2, bytes_per_elem,
                  vmem_budget_bytes=8 << 20, max_rows=1024):
    per_row = 2 * (2 * d1 + d2) * bytes_per_elem      # f1 + f2 + out, double-buffered
    cap = max(8, min(max_rows, vmem_budget_bytes // max(per_row, 1)))
    cap = (cap // 8) * 8
    block_m = min(m, cap)
    return ((block_m + 7) // 8) * 8


# --------------------------------------------------------------------------------------
# Wrapper
# --------------------------------------------------------------------------------------
def residual_tx_fusion(feat_1, feat_2, folded):
    """feat_1: [..., D1]; feat_2: [..., D2]; folded: output of fold_params()."""
    D1 = feat_1.shape[-1]
    D2 = feat_2.shape[-1]
    lead = feat_1.shape[:-1]
    assert feat_2.shape[:-1] == lead, "feat_1 / feat_2 leading dims must match"

    io_dtype = feat_1.dtype
    mm_dtype = jnp.bfloat16 if io_dtype == jnp.bfloat16 else jnp.float32

    f1 = feat_1.reshape(-1, D1)
    f2 = feat_2.reshape(-1, D2)
    M = f1.shape[0]

    block_m = _pick_block_m(M, D1, D2, io_dtype.itemsize)

    # Pad rows to a multiple of block_m with zeros (zero rows -> valid mask 0 -> output 0;
    # sliced off below), so grid = M_pad // block_m exactly and every store is full-tile.
    M_pad = ((M + block_m - 1) // block_m) * block_m
    if M_pad != M:
        f1 = jnp.pad(f1, ((0, M_pad - M), (0, 0)))
        f2 = jnp.pad(f2, ((0, M_pad - M), (0, 0)))
    grid = (M_pad // block_m,)

    w1a, w1b, b1, w2, b2 = (folded["w1a"], folded["w1b"], folded["b1"],
                            folded["w2"], folded["b2"])
    HP = w1a.shape[-1]

    kernel = _fusion_kernel(folded["d_total"], mm_dtype)

    def build(weight_single_buffered):
        wb = {"pipeline_mode": pl.Buffered(1)} if weight_single_buffered else {}

        def full(shape):
            # Constant index_map -> fetched once; single-buffer to halve weight VMEM.
            return pl.BlockSpec(shape, lambda i: (0, 0), **wb)

        return pl.pallas_call(
            kernel,
            out_shape=jax.ShapeDtypeStruct((M_pad, D1), io_dtype),
            grid_spec=pltpu.PrefetchScalarGridSpec(
                num_scalar_prefetch=0,
                grid=grid,
                in_specs=[
                    pl.BlockSpec((block_m, D1), lambda i: (i, 0)),   # feat_1 rows
                    pl.BlockSpec((block_m, D2), lambda i: (i, 0)),   # feat_2 rows
                    full((D1, HP)),                                  # w1a (gamma-folded)
                    full((D2, HP)),                                  # w1b (gamma-folded)
                    full((1, HP)),                                   # b1 (beta-folded, padded)
                    full((HP, D1)),                                  # w2 (zero-row padded)
                    full((1, D1)),                                   # b2
                ],
                out_specs=pl.BlockSpec((block_m, D1), lambda i: (i, 0)),
            ),
            compiler_params=pltpu.CompilerParams(
                dimension_semantics=("parallel",),        # megacore / 2-TC sharding on v7x
                vmem_limit_bytes=32 << 20,                # safe on v5e/v6e/v7x physical VMEM
            ),
        )
        # Note: input_output_aliases={0: 0} is possible when the caller donates feat_1
        # (output shape/dtype match); left off by default to avoid a hidden XLA copy.

    try:
        out_flat = build(True)(f1, f2, w1a, w1b, b1, w2, b2)
    except Exception:
        # TODO(synk): pl.Buffered(1) single-buffering rejected on this jax build; fall back
        # to default double buffering (tiny VMEM cost at these weight sizes).
        out_flat = build(False)(f1, f2, w1a, w1b, b1, w2, b2)

    if M_pad != M:
        out_flat = out_flat[:M]
    return out_flat.reshape(*lead, D1)


# --------------------------------------------------------------------------------------
# Pure-JAX reference (PyTorch module semantics, eval mode) + demo
# --------------------------------------------------------------------------------------
def reference_forward(feat_1, feat_2, params):
    fused = jnp.concatenate([feat_1, feat_2], axis=-1)
    mu = jnp.mean(fused, axis=-1, keepdims=True)
    var = jnp.mean((fused - mu) ** 2, axis=-1, keepdims=True)
    yn = (fused - mu) / jnp.sqrt(var + 1e-5)
    yn = yn * params["gamma"] + params["beta"]
    h = jax.nn.relu(yn @ params["w1"] + params["b1"])
    delta = h @ params["w2"] + params["b2"]
    valid = (jnp.sum(jnp.abs(feat_2), axis=-1, keepdims=True) != 0).astype(feat_1.dtype)
    return feat_1 + delta * valid


def make_params(key, d1, d2, hidden):
    D = d1 + d2
    ks = jax.random.split(key, 6)
    s = 0.05
    return {
        "gamma": 1.0 + 0.1 * jax.random.normal(ks[0], (D,), jnp.float32),
        "beta": 0.1 * jax.random.normal(ks[1], (D,), jnp.float32),
        "w1": s * jax.random.normal(ks[2], (D, hidden), jnp.float32),
        "b1": s * jax.random.normal(ks[3], (hidden,), jnp.float32),
        "w2": s * jax.random.normal(ks[4], (hidden, d1), jnp.float32),
        "b2": s * jax.random.normal(ks[5], (d1,), jnp.float32),
    }


if __name__ == "__main__":
    # Small shapes: batch=2, seq=8, feat1_dim=128 (lane-dense output), feat2_dim=32, hidden=64.
    B, N, D1, D2, HID = 2, 8, 128, 32, 64

    key = jax.random.PRNGKey(0)
    k1, k2, kw = jax.random.split(key, 3)
    feat_1 = jax.random.normal(k1, (B, N, D1), jnp.float32)
    feat_2 = jax.random.normal(k2, (B, N, D2), jnp.float32)
    # A couple of all-zero feat_2 rows exercise the `valid` mask path.
    feat_2 = feat_2.at[0, 0].set(0.0)
    feat_2 = feat_2.at[1, 3].set(0.0)

    params = make_params(kw, D1, D2, HID)
    ref = reference_forward(feat_1, feat_2, params)

    # --- f32 activation path (tight tolerance) ------------------------------------
    folded_f32 = fold_params(params, D1, weight_dtype=jnp.float32)
    out = jax.block_until_ready(residual_tx_fusion(feat_1, feat_2, folded_f32))
    assert out.shape == (B, N, D1)
    assert jnp.allclose(out, ref, rtol=1e-4, atol=1e-4), "f32 path mismatch vs reference"

    # --- bf16 HBM activation path (the big mem-bound win; looser tolerance) -------
    folded_bf16 = fold_params(params, D1, weight_dtype=jnp.bfloat16)
    out_bf16 = jax.block_until_ready(
        residual_tx_fusion(feat_1.astype(jnp.bfloat16),
                           feat_2.astype(jnp.bfloat16),
                           folded_bf16))
    assert out_bf16.shape == (B, N, D1)
    assert jnp.allclose(out_bf16.astype(jnp.float32), ref, rtol=5e-2, atol=5e-2), \
        "bf16 path mismatch vs reference"

    print("KERNEL_OK")
</pallas_src>

<mosaic_0001>
module attributes {stable_mosaic.version = 11 : i64} {
  func.func @kernel(%arg0: i32, %arg1: memref<16x128xf32, #tpu.memory_space<vmem>>, %arg2: memref<16x32xf32, #tpu.memory_space<vmem>>, %arg3: memref<128x128xf32, #tpu.memory_space<vmem>>, %arg4: memref<32x128xf32, #tpu.memory_space<vmem>>, %arg5: memref<1x128xf32, #tpu.memory_space<vmem>>, %arg6: memref<128x128xf32, #tpu.memory_space<vmem>>, %arg7: memref<1x128xf32, #tpu.memory_space<vmem>>, %arg8: memref<16x128xf32, #tpu.memory_space<vmem>>) attributes {dimension_semantics = [#tpu.dimension_semantics<parallel>], iteration_bounds = array<i64: 1>, scalar_prefetch = 0 : i64, scratch_operands = 0 : i64, tpu.core_type = #tpu.core_type<tc>, window_params = [{transform_indices = @transform_0, window_bounds = array<i64: 16, 128>}, {transform_indices = @transform_1, window_bounds = array<i64: 16, 32>}, {pipeline_mode = #tpu.pipeline_mode<synchronous>, transform_indices = @transform_2, window_bounds = array<i64: 128, 128>}, {pipeline_mode = #tpu.pipeline_mode<synchronous>, transform_indices = @transform_3, window_bounds = array<i64: 32, 128>}, {pipeline_mode = #tpu.pipeline_mode<synchronous>, transform_indices = @transform_4, window_bounds = array<i64: 1, 128>}, {pipeline_mode = #tpu.pipeline_mode<synchronous>, transform_indices = @transform_5, window_bounds = array<i64: 128, 128>}, {pipeline_mode = #tpu.pipeline_mode<synchronous>, transform_indices = @transform_6, window_bounds = array<i64: 1, 128>}, {transform_indices = @transform_7, window_bounds = array<i64: 16, 128>}]} {
    %c0 = arith.constant 0 : index
    %c0_0 = arith.constant 0 : index
    %0 = vector.load %arg1[%c0, %c0_0] : memref<16x128xf32, #tpu.memory_space<vmem>>, vector<16x128xf32>
    %c0_1 = arith.constant 0 : index
    %c0_2 = arith.constant 0 : index
    %1 = vector.load %arg2[%c0_1, %c0_2] : memref<16x32xf32, #tpu.memory_space<vmem>>, vector<16x32xf32>
    %cst = arith.constant dense<0.000000e+00> : vector<16xf32>
    %2 = vector.multi_reduction <add>, %0, %cst [1] : vector<16x128xf32> to vector<16xf32>
    %3 = vector.shape_cast %2 : vector<16xf32> to vector<16x1xf32>
    %cst_3 = arith.constant dense<0.000000e+00> : vector<16xf32>
    %4 = vector.multi_reduction <add>, %1, %cst_3 [1] : vector<16x32xf32> to vector<16xf32>
    %5 = vector.shape_cast %4 : vector<16xf32> to vector<16x1xf32>
    %6 = arith.addf %3, %5 : vector<16x1xf32>
    %7 = arith.mulf %0, %0 : vector<16x128xf32>
    %cst_4 = arith.constant dense<0.000000e+00> : vector<16xf32>
    %8 = vector.multi_reduction <add>, %7, %cst_4 [1] : vector<16x128xf32> to vector<16xf32>
    %9 = vector.shape_cast %8 : vector<16xf32> to vector<16x1xf32>
    %10 = arith.mulf %1, %1 : vector<16x32xf32>
    %cst_5 = arith.constant dense<0.000000e+00> : vector<16xf32>
    %11 = vector.multi_reduction <add>, %10, %cst_5 [1] : vector<16x32xf32> to vector<16xf32>
    %12 = vector.shape_cast %11 : vector<16xf32> to vector<16x1xf32>
    %13 = arith.addf %9, %12 : vector<16x1xf32>
    %cst_6 = arith.constant 6.250000e-03 : f32
    %14 = vector.broadcast %cst_6 : f32 to vector<16x1xf32>
    %15 = arith.mulf %6, %14 : vector<16x1xf32>
    %cst_7 = arith.constant 6.250000e-03 : f32
    %16 = vector.broadcast %cst_7 : f32 to vector<16x1xf32>
    %17 = arith.mulf %13, %16 : vector<16x1xf32>
    %18 = arith.mulf %15, %15 : vector<16x1xf32>
    %19 = arith.subf %17, %18 : vector<16x1xf32>
    %cst_8 = arith.constant 0.000000e+00 : f32
    %20 = vector.broadcast %cst_8 : f32 to vector<16x1xf32>
    %21 = arith.maximumf %19, %20 : vector<16x1xf32>
    %cst_9 = arith.constant 9.99999974E-6 : f32
    %22 = vector.broadcast %cst_9 : f32 to vector<16x1xf32>
    %23 = arith.addf %21, %22 : vector<16x1xf32>
    %24 = math.rsqrt %23 : vector<16x1xf32>
    %25 = vector.broadcast %15 : vector<16x1xf32> to vector<16x128xf32>
    %26 = arith.subf %0, %25 : vector<16x128xf32>
    %27 = vector.broadcast %24 : vector<16x1xf32> to vector<16x128xf32>
    %28 = arith.mulf %26, %27 : vector<16x128xf32>
    %29 = vector.broadcast %15 : vector<16x1xf32> to vector<16x32xf32>
    %30 = arith.subf %1, %29 : vector<16x32xf32>
    %31 = vector.broadcast %24 : vector<16x1xf32> to vector<16x32xf32>
    %32 = arith.mulf %30, %31 : vector<16x32xf32>
    %c0_10 = arith.constant 0 : index
    %c0_11 = arith.constant 0 : index
    %33 = vector.load %arg3[%c0_10, %c0_11] : memref<128x128xf32, #tpu.memory_space<vmem>>, vector<128x128xf32>
    %cst_12 = arith.constant dense<0.000000e+00> : vector<16x128xf32>
    %34 = tpu.matmul %28, %33, %cst_12 {dimension_numbers = #tpu.dot_dimension_numbers<[1], [0], [0], [1], [0, 0, 1, 1], [], []>} : vector<16x128xf32>, vector<128x128xf32>, vector<16x128xf32> -> vector<16x128xf32>
    %c0_13 = arith.constant 0 : index
    %c0_14 = arith.constant 0 : index
    %35 = vector.load %arg4[%c0_13, %c0_14] : memref<32x128xf32, #tpu.memory_space<vmem>>, vector<32x128xf32>
    %cst_15 = arith.constant dense<0.000000e+00> : vector<16x128xf32>
    %36 = tpu.matmul %32, %35, %cst_15 {dimension_numbers = #tpu.dot_dimension_numbers<[1], [0], [0], [1], [0, 0, 1, 1], [], []>} : vector<16x32xf32>, vector<32x128xf32>, vector<16x128xf32> -> vector<16x128xf32>
    %37 = arith.addf %34, %36 : vector<16x128xf32>
    %c0_16 = arith.constant 0 : index
    %c0_17 = arith.constant 0 : index
    %38 = vector.load %arg5[%c0_16, %c0_17] : memref<1x128xf32, #tpu.memory_space<vmem>>, vector<1x128xf32>
    %39 = vector.broadcast %38 : vector<1x128xf32> to vector<16x128xf32>
    %40 = arith.addf %37, %39 : vector<16x128xf32>
    %cst_18 = arith.constant 0.000000e+00 : f32
    %41 = vector.broadcast %cst_18 : f32 to vector<16x128xf32>
    %42 = arith.maximumf %40, %41 : vector<16x128xf32>
    %c0_19 = arith.constant 0 : index
    %c0_20 = arith.constant 0 : index
    %43 = vector.load %arg6[%c0_19, %c0_20] : memref<128x128xf32, #tpu.memory_space<vmem>>, vector<128x128xf32>
    %cst_21 = arith.constant dense<0.000000e+00> : vector<16x128xf32>
    %44 = tpu.matmul %42, %43, %cst_21 {dimension_numbers = #tpu.dot_dimension_numbers<[1], [0], [0], [1], [0, 0, 1, 1], [], []>} : vector<16x128xf32>, vector<128x128xf32>, vector<16x128xf32> -> vector<16x128xf32>
    %c0_22 = arith.constant 0 : index
    %c0_23 = arith.constant 0 : index
    %45 = vector.load %arg7[%c0_22, %c0_23] : memref<1x128xf32, #tpu.memory_space<vmem>>, vector<1x128xf32>
    %46 = vector.broadcast %45 : vector<1x128xf32> to vector<16x128xf32>
    %47 = arith.addf %44, %46 : vector<16x128xf32>
    %48 = math.absf %1 : vector<16x32xf32>
    %cst_24 = arith.constant dense<0.000000e+00> : vector<16xf32>
    %49 = vector.multi_reduction <add>, %48, %cst_24 [1] : vector<16x32xf32> to vector<16xf32>
    %50 = vector.shape_cast %49 : vector<16xf32> to vector<16x1xf32>
    %cst_25 = arith.constant 0.000000e+00 : f32
    %51 = vector.broadcast %cst_25 : f32 to vector<16x1xf32>
    %52 = arith.cmpf one, %50, %51 : vector<16x1xf32>
    %53 = arith.extui %52 : vector<16x1xi1> to vector<16x1xi32>
    %54 = arith.sitofp %53 : vector<16x1xi32> to vector<16x1xf32>
    %55 = vector.broadcast %54 : vector<16x1xf32> to vector<16x128xf32>
    %56 = arith.mulf %47, %55 : vector<16x128xf32>
    %57 = arith.addf %0, %56 : vector<16x128xf32>
    %c0_26 = arith.constant 0 : index
    %c0_27 = arith.constant 0 : index
    %58 = vector.load %arg8[%c0_26, %c0_27] : memref<16x128xf32, #tpu.memory_space<vmem>>, vector<16x128xf32>
    tpu.vector_store %arg8[%c0_26, %c0_27], %57 {strides = array<i32>} : memref<16x128xf32, #tpu.memory_space<vmem>>, vector<16x128xf32>,
    return
  }
  func.func @transform_0(%arg0: i32) -> (i32, i32) {
    %c0_i32 = arith.constant 0 : i32
    %c0_i32_0 = arith.constant 0 : i32
    return %arg0, %c0_i32 : i32, i32
  }
  func.func @transform_1(%arg0: i32) -> (i32, i32) {
    %c0_i32 = arith.constant 0 : i32
    %c0_i32_0 = arith.constant 0 : i32
    return %arg0, %c0_i32 : i32, i32
  }
  func.func @transform_2(%arg0: i32) -> (i32, i32) {
    %c0_i32 = arith.constant 0 : i32
    %c0_i32_0 = arith.constant 0 : i32
    %c0_i32_1 = arith.constant 0 : i32
    return %c0_i32, %c0_i32_0 : i32, i32
  }
  func.func @transform_3(%arg0: i32) -> (i32, i32) {
    %c0_i32 = arith.constant 0 : i32
    %c0_i32_0 = arith.constant 0 : i32
    %c0_i32_1 = arith.constant 0 : i32
    return %c0_i32, %c0_i32_0 : i32, i32
  }
  func.func @transform_4(%arg0: i32) -> (i32, i32) {
    %c0_i32 = arith.constant 0 : i32
    %c0_i32_0 = arith.constant 0 : i32
    %c0_i32_1 = arith.constant 0 : i32
    return %c0_i32, %c0_i32_0 : i32, i32
  }
  func.func @transform_5(%arg0: i32) -> (i32, i32) {
    %c0_i32 = arith.constant 0 : i32
    %c0_i32_0 = arith.constant 0 : i32
    %c0_i32_1 = arith.constant 0 : i32
    return %c0_i32, %c0_i32_0 : i32, i32
  }
  func.func @transform_6(%arg0: i32) -> (i32, i32) {
    %c0_i32 = arith.constant 0 : i32
    %c0_i32_0 = arith.constant 0 : i32
    %c0_i32_1 = arith.constant 0 : i32
    return %c0_i32, %c0_i32_0 : i32, i32
  }
  func.func @transform_7(%arg0: i32) -> (i32, i32) {
    %c0_i32 = arith.constant 0 : i32
    %c0_i32_0 = arith.constant 0 : i32
    return %arg0, %c0_i32 : i32, i32
  }
}

module attributes {stable_mosaic.version = 11 : i64} {
  func.func @kernel(%arg0: i32, %arg1: memref<16x128xf32, #tpu.memory_space<vmem>>, %arg2: memref<16x32xf32, #tpu.memory_space<vmem>>, %arg3: memref<128x128xf32, #tpu.memory_space<vmem>>, %arg4: memref<32x128xf32, #tpu.memory_space<vmem>>, %arg5: memref<1x128xf32, #tpu.memory_space<vmem>>, %arg6: memref<128x128xf32, #tpu.memory_space<vmem>>, %arg7: memref<1x128xf32, #tpu.memory_space<vmem>>, %arg8: memref<16x128xf32, #tpu.memory_space<vmem>>) attributes {dimension_semantics = [#tpu.dimension_semantics<parallel>], iteration_bounds = array<i64: 1>, scalar_prefetch = 0 : i64, scratch_operands = 0 : i64, tpu.core_type = #tpu.core_type<tc>, window_params = [{transform_indices = @transform_0, window_bounds = array<i64: 16, 128>}, {transform_indices = @transform_1, window_bounds = array<i64: 16, 32>}, {pipeline_mode = #tpu.pipeline_mode<synchronous>, transform_indices = @transform_2, window_bounds = array<i64: 128, 128>}, {pipeline_mode = #tpu.pipeline_mode<synchronous>, transform_indices = @transform_3, window_bounds = array<i64: 32, 128>}, {pipeline_mode = #tpu.pipeline_mode<synchronous>, transform_indices = @transform_4, window_bounds = array<i64: 1, 128>}, {pipeline_mode = #tpu.pipeline_mode<synchronous>, transform_indices = @transform_5, window_bounds = array<i64: 128, 128>}, {pipeline_mode = #tpu.pipeline_mode<synchronous>, transform_indices = @transform_6, window_bounds = array<i64: 1, 128>}, {transform_indices = @transform_7, window_bounds = array<i64: 16, 128>}]} {
    %c0 = arith.constant 0 : index
    %c0_0 = arith.constant 0 : index
    %0 = vector.load %arg1[%c0, %c0_0] : memref<16x128xf32, #tpu.memory_space<vmem>>, vector<16x128xf32>
    %c0_1 = arith.constant 0 : index
    %c0_2 = arith.constant 0 : index
    %1 = vector.load %arg2[%c0_1, %c0_2] : memref<16x32xf32, #tpu.memory_space<vmem>>, vector<16x32xf32>
    %cst = arith.constant dense<0.000000e+00> : vector<16xf32>
    %2 = vector.multi_reduction <add>, %0, %cst [1] : vector<16x128xf32> to vector<16xf32>
    %3 = vector.shape_cast %2 : vector<16xf32> to vector<16x1xf32>
    %cst_3 = arith.constant dense<0.000000e+00> : vector<16xf32>
    %4 = vector.multi_reduction <add>, %1, %cst_3 [1] : vector<16x32xf32> to vector<16xf32>
    %5 = vector.shape_cast %4 : vector<16xf32> to vector<16x1xf32>
    %6 = arith.addf %3, %5 : vector<16x1xf32>
    %7 = arith.mulf %0, %0 : vector<16x128xf32>
    %cst_4 = arith.constant dense<0.000000e+00> : vector<16xf32>
    %8 = vector.multi_reduction <add>, %7, %cst_4 [1] : vector<16x128xf32> to vector<16xf32>
    %9 = vector.shape_cast %8 : vector<16xf32> to vector<16x1xf32>
    %10 = arith.mulf %1, %1 : vector<16x32xf32>
    %cst_5 = arith.constant dense<0.000000e+00> : vector<16xf32>
    %11 = vector.multi_reduction <add>, %10, %cst_5 [1] : vector<16x32xf32> to vector<16xf32>
    %12 = vector.shape_cast %11 : vector<16xf32> to vector<16x1xf32>
    %13 = arith.addf %9, %12 : vector<16x1xf32>
    %cst_6 = arith.constant 6.250000e-03 : f32
    %14 = vector.broadcast %cst_6 : f32 to vector<16x1xf32>
    %15 = arith.mulf %6, %14 : vector<16x1xf32>
    %cst_7 = arith.constant 6.250000e-03 : f32
    %16 = vector.broadcast %cst_7 : f32 to vector<16x1xf32>
    %17 = arith.mulf %13, %16 : vector<16x1xf32>
    %18 = arith.mulf %15, %15 : vector<16x1xf32>
    %19 = arith.subf %17, %18 : vector<16x1xf32>
    %cst_8 = arith.constant 0.000000e+00 : f32
    %20 = vector.broadcast %cst_8 : f32 to vector<16x1xf32>
    %21 = arith.maximumf %19, %20 : vector<16x1xf32>
    %cst_9 = arith.constant 9.99999974E-6 : f32
    %22 = vector.broadcast %cst_9 : f32 to vector<16x1xf32>
    %23 = arith.addf %21, %22 : vector<16x1xf32>
    %24 = math.rsqrt %23 : vector<16x1xf32>
    %25 = vector.broadcast %15 : vector<16x1xf32> to vector<16x128xf32>
    %26 = arith.subf %0, %25 : vector<16x128xf32>
    %27 = vector.broadcast %24 : vector<16x1xf32> to vector<16x128xf32>
    %28 = arith.mulf %26, %27 : vector<16x128xf32>
    %29 = vector.broadcast %15 : vector<16x1xf32> to vector<16x32xf32>
    %30 = arith.subf %1, %29 : vector<16x32xf32>
    %31 = vector.broadcast %24 : vector<16x1xf32> to vector<16x32xf32>
    %32 = arith.mulf %30, %31 : vector<16x32xf32>
    %c0_10 = arith.constant 0 : index
    %c0_11 = arith.constant 0 : index
    %33 = vector.load %arg3[%c0_10, %c0_11] : memref<128x128xf32, #tpu.memory_space<vmem>>, vector<128x128xf32>
    %cst_12 = arith.constant dense<0.000000e+00> : vector<16x128xf32>
    %34 = tpu.matmul %28, %33, %cst_12 {dimension_numbers = #tpu.dot_dimension_numbers<[1], [0], [0], [1], [0, 0, 1, 1], [], []>} : vector<16x128xf32>, vector<128x128xf32>, vector<16x128xf32> -> vector<16x128xf32>
    %c0_13 = arith.constant 0 : index
    %c0_14 = arith.constant 0 : index
    %35 = vector.load %arg4[%c0_13, %c0_14] : memref<32x128xf32, #tpu.memory_space<vmem>>, vector<32x128xf32>
    %cst_15 = arith.constant dense<0.000000e+00> : vector<16x128xf32>
    %36 = tpu.matmul %32, %35, %cst_15 {dimension_numbers = #tpu.dot_dimension_numbers<[1], [0], [0], [1], [0, 0, 1, 1], [], []>} : vector<16x32xf32>, vector<32x128xf32>, vector<16x128xf32> -> vector<16x128xf32>
    %37 = arith.addf %34, %36 : vector<16x128xf32>
    %c0_16 = arith.constant 0 : index
    %c0_17 = arith.constant 0 : index
    %38 = vector.load %arg5[%c0_16, %c0_17] : memref<1x128xf32, #tpu.memory_space<vmem>>, vector<1x128xf32>
    %39 = vector.broadcast %38 : vector<1x128xf32> to vector<16x128xf32>
    %40 = arith.addf %37, %39 : vector<16x128xf32>
    %cst_18 = arith.constant 0.000000e+00 : f32
    %41 = vector.broadcast %cst_18 : f32 to vector<16x128xf32>
    %42 = arith.maximumf %40, %41 : vector<16x128xf32>
    %c0_19 = arith.constant 0 : index
    %c0_20 = arith.constant 0 : index
    %43 = vector.load %arg6[%c0_19, %c0_20] : memref<128x128xf32, #tpu.memory_space<vmem>>, vector<128x128xf32>
    %cst_21 = arith.constant dense<0.000000e+00> : vector<16x128xf32>
    %44 = tpu.matmul %42, %43, %cst_21 {dimension_numbers = #tpu.dot_dimension_numbers<[1], [0], [0], [1], [0, 0, 1, 1], [], []>} : vector<16x128xf32>, vector<128x128xf32>, vector<16x128xf32> -> vector<16x128xf32>
    %c0_22 = arith.constant 0 : index
    %c0_23 = arith.constant 0 : index
    %45 = vector.load %arg7[%c0_22, %c0_23] : memref<1x128xf32, #tpu.memory_space<vmem>>, vector<1x128xf32>
    %46 = vector.broadcast %45 : vector<1x128xf32> to vector<16x128xf32>
    %47 = arith.addf %44, %46 : vector<16x128xf32>
    %48 = math.absf %1 : vector<16x32xf32>
    %cst_24 = arith.constant dense<0.000000e+00> : vector<16xf32>
    %49 = vector.multi_reduction <add>, %48, %cst_24 [1] : vector<16x32xf32> to vector<16xf32>
    %50 = vector.shape_cast %49 : vector<16xf32> to vector<16x1xf32>
    %cst_25 = arith.constant 0.000000e+00 : f32
    %51 = vector.broadcast %cst_25 : f32 to vector<16x1xf32>
    %52 = arith.cmpf one, %50, %51 : vector<16x1xf32>
    %53 = arith.extui %52 : vector<16x1xi1> to vector<16x1xi32>
    %54 = arith.sitofp %53 : vector<16x1xi32> to vector<16x1xf32>
    %55 = vector.broadcast %54 : vector<16x1xf32> to vector<16x128xf32>
    %56 = arith.mulf %47, %55 : vector<16x128xf32>
    %57 = arith.addf %0, %56 : vector<16x128xf32>
    %c0_26 = arith.constant 0 : index
    %c0_27 = arith.constant 0 : index
    %58 = vector.load %arg8[%c0_26, %c0_27] : memref<16x128xf32, #tpu.memory_space<vmem>>, vector<16x128xf32>
    tpu.vector_store %arg8[%c0_26, %c0_27], %57 {strides = array<i32>} : memref<16x128xf32, #tpu.memory_space<vmem>>, vector<16x128xf32>,
    return
  }
  func.func @transform_0(%arg0: i32) -> (i32, i32) {
    %c0_i32 = arith.constant 0 : i32
    %c0_i32_0 = arith.constant 0 : i32
    return %arg0, %c0_i32 : i32, i32
  }
  func.func @transform_1(%arg0: i32) -> (i32, i32) {
    %c0_i32 = arith.constant 0 : i32
    %c0_i32_0 = arith.constant 0 : i32
    return %arg0, %c0_i32 : i32, i32
  }
  func.func @transform_2(%arg0: i32) -> (i32, i32) {
    %c0_i32 = arith.constant 0 : i32
    %c0_i32_0 = arith.constant 0 : i32
    %c0_i32_1 = arith.constant 0 : i32
    return %c0_i32, %c0_i32_0 : i32, i32
  }
  func.func @transform_3(%arg0: i32) -> (i32, i32) {
    %c0_i32 = arith.constant 0 : i32
    %c0_i32_0 = arith.constant 0 : i32
    %c0_i32_1 = arith.constant 0 : i32
    return %c0_i32, %c0_i32_0 : i32, i32
  }
  func.func @transform_4(%arg0: i32) -> (i32, i32) {
    %c0_i32 = arith.constant 0 : i32
    %c0_i32_0 = arith.constant 0 : i32
    %c0_i32_1 = arith.constant 0 : i32
    return %c0_i32, %c0_i32_0 : i32, i32
  }
  func.func @transform_5(%arg0: i32) -> (i32, i32) {
    %c0_i32 = arith.constant 0 : i32
    %c0_i32_0 = arith.constant 0 : i32
    %c0_i32_1 = arith.constant 0 : i32
    return %c0_i32, %c0_i32_0 : i32, i32
  }
  func.func @transform_6(%arg0: i32) -> (i32, i32) {
    %c0_i32 = arith.constant 0 : i32
    %c0_i32_0 = arith.constant 0 : i32
    %c0_i32_1 = arith.constant 0 : i32
    return %c0_i32, %c0_i32_0 : i32, i32
  }
  func.func @transform_7(%arg0: i32) -> (i32, i32) {
    %c0_i32 = arith.constant 0 : i32
    %c0_i32_0 = arith.constant 0 : i32
    return %arg0, %c0_i32 : i32, i32
  }
}

</mosaic_0001>

<bundles_post_ra>
// kernel: tpu_custom_call.1
= control target key start
LH: loop header
LB: loop body
LE: loop exit
PB: predicated region body
PF: predicated region fallthrough
CT: control target
= control target key end

     0   :  { %12 = vsyncpa [#allocation3], 0  ;;  %s1035_s0 = inlined_call_operand.hbm [shape: f32[16,128], index: 0, kind: input, shape index: {}]   ;;  %s1036_s1 = inlined_call_operand.hbm [shape: f32[16,32], index: 1, kind: input, shape index: {}]   ;;  %s1037_s2 = inlined_call_operand.hbm [shape: f32[128,128], index: 2, kind: input, shape index: {}]   ;;  %s1038_s3 = inlined_call_operand.hbm [shape: f32[32,128], index: 3, kind: input, shape index: {}]   ;;  %s1039_s4 = inlined_call_operand.vmem [shape: f32[1,128], index: 4, kind: input, shape index: {}]   ;;  %s1040_s5 = inlined_call_operand.hbm [shape: f32[128,128], index: 5, kind: input, shape index: {}]   ;;  %s1041_s6 = inlined_call_operand.vmem [shape: f32[1,128], index: 6, kind: input, shape index: {}]   ;;  %s1042_s7 = inlined_call_operand.hbm [shape: f32[16,128], index: 7, kind: output, shape index: {}]  }
   0x1   :  { %13 = vsyncpa [#allocation6], 0 }
   0x2   :  { %14 = vsyncpa [#allocation9], 0 }
   0x3   :  { %15 = vsyncpa [#allocation4], 0  ;;  %s830_s24 = smov [#allocation5]   ;;  %s831_s26 = smov [#allocation8]  }
   0x4   :  { %s33_s25 = sshll.u32 %s830_s24, 4  ;;  %s57_s27 = sshll.u32 %s831_s26, 4  ;;  %s34_s25 = int_to_ptr.vmem [resolvable:$true] %s33_s25  ;;  %s879_s27 = int_to_ptr.vmem [resolvable:$true] %s57_s27 }
   0x5   :  { %s690_s30 = scalar_lea.hbm %s1036_s1, 256 }
   0x6   :  { %p691_p0 = scmp.ne.s32.totalorder %s1036_s1, %s690_s30  ;;  %p694_p1 = scmp.lt.u32.totalorder %s690_s30, %s1036_s1 }
   0x8   :  { %p696_p2 = pnand %p694_p1, %p691_p0 }
   0xa   :  { %699 = shalt.err (!%p696_p2)
}
   0xb   :  { %s700_s12 = scalar_lea.vmem %s34_s25, 256  ;;  %p705_p4 = scmp.lt.s32.totalorder %s34_s25, %s34_s25 }
   0xc   :  { %p701_p3 = scmp.ne.s32.totalorder %s34_s25, %s700_s12  ;;  %p706_p5 = scmp.lt.s32.totalorder %s700_s12, %s700_s12 }
   0xe   :  { %p707_p6 = por %p706_p5, %p705_p4 }
  0x10   :  { %p708_p7 = pnand %p707_p6, %p701_p3 }
  0x12   :  { %711 = shalt.err (!%p708_p7)
}
  0x13   :  { %s832_s13 = smov 128   ;;  %s833_s14 = smov 8  }
  0x14   :  { %39 = dma.hbm_to_vmem [thread:$0]  %s1036_s1, 256, %s34_s25, [#allocation6], %s832_s13, %s832_s13, %s833_s14  }
  0x15   :  { %s712_s19 = scalar_lea.hbm %s1038_s3, 512 }
  0x16   :  { %p713_p8 = scmp.ne.s32.totalorder %s1038_s3, %s712_s19  ;;  %p716_p9 = scmp.lt.u32.totalorder %s712_s19, %s1038_s3 }
  0x18   :  { %p718_p10 = pnand %p716_p9, %p713_p8 }
  0x1a   :  { %721 = shalt.err (!%p718_p10)
}
  0x1b   :  { %s722_s24 = scalar_lea.vmem %s879_s27, 512  ;;  %p727_p12 = scmp.lt.s32.totalorder %s879_s27, %s879_s27 }
  0x1c   :  { %p723_p11 = scmp.ne.s32.totalorder %s879_s27, %s722_s24  ;;  %p728_p13 = scmp.lt.s32.totalorder %s722_s24, %s722_s24 }
  0x1e   :  { %p729_p0 = por %p728_p13, %p727_p12 }
  0x20   :  { %p730_p1 = pnand %p729_p0, %p723_p11 }
  0x22   :  { %733 = shalt.err (!%p730_p1)
}
  0x23   :  { %63 = dma.hbm_to_vmem [thread:$0]  %s1038_s3, 512, %s879_s27, [#allocation9], %s832_s13, %s832_s13, %s833_s14  }
  0x24   :  { %s834_s26 = smov [#allocation2]   ;;  %s835_s29 = smov [#allocation7]  }
  0x25   :  { %s21_s28 = sshll.u32 %s834_s26, 4  ;;  %s45_s30 = sshll.u32 %s835_s29, 4  ;;  %s22_s28 = int_to_ptr.vmem [resolvable:$true] %s21_s28  ;;  %s916_s30 = int_to_ptr.vmem [resolvable:$true] %s45_s30 }
  0x26   :  { %s734_s10 = scalar_lea.hbm %s1035_s0, 256 }
  0x27   :  { %p735_p2 = scmp.ne.s32.totalorder %s1035_s0, %s734_s10  ;;  %p738_p3 = scmp.lt.u32.totalorder %s734_s10, %s1035_s0 }
  0x29   :  { %p740_p4 = pnand %p738_p3, %p735_p2 }
  0x2b   :  { %743 = shalt.err (!%p740_p4)
}
  0x2c   :  { %s744_s3 = scalar_lea.vmem %s22_s28, 256  ;;  %p749_p6 = scmp.lt.s32.totalorder %s22_s28, %s22_s28 }
  0x2d   :  { %p745_p5 = scmp.ne.s32.totalorder %s22_s28, %s744_s3  ;;  %p750_p7 = scmp.lt.s32.totalorder %s744_s3, %s744_s3 }
  0x2f   :  { %p751_p8 = por %p750_p7, %p749_p6 }
  0x31   :  { %p752_p9 = pnand %p751_p8, %p745_p5 }
  0x33   :  { %755 = shalt.err (!%p752_p9)
}
  0x34   :  { %27 = dma.hbm_to_vmem [thread:$0]  %s1035_s0, 256, %s22_s28, [#allocation3], %s832_s13, %s832_s13, %s833_s14  }
  0x35   :  { %s756_s20 = scalar_lea.hbm %s1037_s2, 2048 }
  0x36   :  { %p757_p10 = scmp.ne.s32.totalorder %s1037_s2, %s756_s20  ;;  %p760_p11 = scmp.lt.u32.totalorder %s756_s20, %s1037_s2 }
  0x38   :  { %p762_p12 = pnand %p760_p11, %p757_p10 }
  0x3a   :  { %765 = shalt.err (!%p762_p12)
}
  0x3b   :  { %s766_s1 = scalar_lea.vmem %s916_s30, 2048  ;;  %p771_p0 = scmp.lt.s32.totalorder %s916_s30, %s916_s30 }
  0x3c   :  { %p767_p13 = scmp.ne.s32.totalorder %s916_s30, %s766_s1  ;;  %p772_p1 = scmp.lt.s32.totalorder %s766_s1, %s766_s1 }
  0x3e   :  { %p773_p2 = por %p772_p1, %p771_p0 }
  0x40   :  { %p774_p3 = pnand %p773_p2, %p767_p13 }
  0x42   :  { %777 = shalt.err (!%p774_p3)
}
  0x43   :  { %51 = dma.hbm_to_vmem [thread:$0]  %s1037_s2, 2048, %s916_s30, [#allocation6], %s832_s13, %s832_s13, %s833_s14  }
  0x44   :  { %s836_s26 = smov [#allocation10]   ;;  %s778_s9 = scalar_lea.hbm %s1040_s5, 2048 }
  0x45   :  { %s71_s28 = sshll.u32 %s836_s26, 4  ;;  %p779_p4 = scmp.ne.s32.totalorder %s1040_s5, %s778_s9  ;;  %s72_s28 = int_to_ptr.vmem [resolvable:$true] %s71_s28 }
  0x46   :  { %p782_p5 = scmp.lt.u32.totalorder %s778_s9, %s1040_s5 }
  0x48   :  { %p784_p6 = pnand %p782_p5, %p779_p4 }
  0x4a   :  { %787 = shalt.err (!%p784_p6)
}
  0x4b   :  { %s788_s16 = scalar_lea.vmem %s72_s28, 2048  ;;  %p793_p8 = scmp.lt.s32.totalorder %s72_s28, %s72_s28 }
  0x4c   :  { %p789_p7 = scmp.ne.s32.totalorder %s72_s28, %s788_s16  ;;  %p794_p9 = scmp.lt.s32.totalorder %s788_s16, %s788_s16 }
  0x4e   :  { %p795_p10 = por %p794_p9, %p793_p8 }
  0x50   :  { %p796_p11 = pnand %p795_p10, %p789_p7 }
  0x52   :  { %799 = shalt.err (!%p796_p11)
}
  0x53   :  { %77 = dma.hbm_to_vmem [thread:$0]  %s1040_s5, 2048, %s72_s28, [#allocation9], %s832_s13, %s832_s13, %s833_s14  }
  0x54   :  { %822 = dma.done.wait [#allocation3], 256  }
  0x55   :  { %823 = vsyncadd [#allocation3], 4294967040 }
  0x56   :  { %824 = dma.done.wait [#allocation6], 2304  }
  0x57   :  { %825 = vsyncadd [#allocation6], 4294964992 }
  0x58   :  { %826 = dma.done.wait [#allocation9], 2560  }
  0x59   :  { %827 = vsyncadd [#allocation9], 4294964736  ;;  %vm103_vm0 = vcmask 261120   ;;  %v968_v0 = vld [vmem:[#allocation2 + $0x8] sm:$0xff]  ;;  %v970_v1 = vld [vmem:[#allocation2] sm:$0xff] }
  0x5a   :  { %v972_v2 = vld [vmem:[#allocation5 + $0x8] sm:$0xff]  ;;  %101 = vadd.xlane.f32.xlu1 %v968_v0  ;;  %99 = vadd.xlane.f32.xlu0 %v970_v1  ;;  %v976_v3 = vld [vmem:[#allocation5] sm:$0xff]  ;;  %v112_v7 = vmul.f32 %v970_v1, %v970_v1  ;;  %v113_v10 = vmul.f32 %v968_v0, %v968_v0  ;;  %v166_v12 = vld [vmem:[#allocation8] sm:$0xff] }
  0x5b   :  { %v107_v4 = vsel %vm103_vm0, %v972_v2, 0.0  ;;  %v104_v5 = vsel %vm103_vm0, %v976_v3, 0.0  ;;  %v118_v6 = vmul.f32 %v976_v3, %v976_v3  ;;  %v119_v9 = vmul.f32 %v972_v2, %v972_v2  ;;  %v167_v13 = vld [vmem:[#allocation8 + $0x8] sm:$0xff]  ;;  %v168_v14 = vld [vmem:[#allocation8 + $0x10] sm:$0xff]  ;;  %v169_v16 = vld [vmem:[#allocation8 + $0x18] sm:$0xff] }
  0x5c   :  { %v603_v15 = vpack.c.bf16 %v167_v13, %v166_v12  ;;  %v607_v17 = vpack.c.bf16 %v169_v16, %v168_v14  ;;  %v150_v18 = vld [vmem:[#allocation7] sm:$0xff]  ;;  %v151_v19 = vld [vmem:[#allocation7 + $0x8] sm:$0xff]  ;;  %v339_v23 = vld [vmem:[#allocation10 + $0x10] sm:$0xff] }
  0x5d   :  { %v120_v8 = vsel %vm103_vm0, %v118_v6, 0.0  ;;  %v123_v11 = vsel %vm103_vm0, %v119_v9, 0.0  ;;  %v992_v20 = vpack.c.bf16 %v151_v19, %v150_v18  ;;  %v337_v21 = vld [vmem:[#allocation10] sm:$0xff]  ;;  %v338_v22 = vld [vmem:[#allocation10 + $0x8] sm:$0xff]  ;;  %v340_v25 = vld [vmem:[#allocation10 + $0x18] sm:$0xff] }
  0x5e   :  { %108 = vadd.xlane.f32.xlu1 %v107_v4  ;;  %105 = vadd.xlane.f32.xlu0 %v104_v5  ;;  %v643_v24 = vpack.c.bf16 %v338_v22, %v337_v21  ;;  %v647_v26 = vpack.c.bf16 %v340_v25, %v339_v23  ;;  %v341_v27 = vld [vmem:[#allocation10 + $0x20] sm:$0xff]  ;;  %v342_v28 = vld [vmem:[#allocation10 + $0x28] sm:$0xff]  ;;  %v343_v30 = vld [vmem:[#allocation10 + $0x30] sm:$0xff] }
  0x5f   :  { %604 = vmatprep.subr.bf16.mxu0 %v603_v15  ;;  %v651_v29 = vpack.c.bf16 %v342_v28, %v341_v27  ;;  %v344_v31 = vld [vmem:[#allocation10 + $0x38] sm:$0xff]  ;;  %v345_v33 = vld [vmem:[#allocation10 + $0x40] sm:$0xff]  ;;  %v346_v34 = vld [vmem:[#allocation10 + $0x48] sm:$0xff] }
  0x60   :  { %606 = vmatpush3.bf16.msra.mxu0 %v603_v15  ;;  %644 = vmatprep.subr.bf16.mxu1 %v643_v24  ;;  %v655_v32 = vpack.c.bf16 %v344_v31, %v343_v30  ;;  %v659_v35 = vpack.c.bf16 %v346_v34, %v345_v33  ;;  %v347_v36 = vld [vmem:[#allocation10 + $0x50] sm:$0xff]  ;;  %v348_v37 = vld [vmem:[#allocation10 + $0x58] sm:$0xff]  ;;  %v349_v39 = vld [vmem:[#allocation10 + $0x60] sm:$0xff] }
  0x61   :  { %608 = vmatprep.subr.bf16.mxu0 %v607_v17  ;;  %646 = vmatpush3.bf16.msra.mxu1 %v643_v24  ;;  %v663_v38 = vpack.c.bf16 %v348_v37, %v347_v36  ;;  %v350_v40 = vld [vmem:[#allocation10 + $0x68] sm:$0xff]  ;;  %v152_v9 = vld [vmem:[#allocation7 + $0x10] sm:$0xff]  ;;  %v157_v22 = vld [vmem:[#allocation7 + $0x38] sm:$0xff] }
  0x62   :  { %121 = vadd.xlane.f32.xlu1 %v120_v8  ;;  %114 = vadd.xlane.f32.xlu0 %v112_v7  ;;  %v667_v41 = vpack.c.bf16 %v350_v40, %v349_v39  ;;  %v155_v18 = vld [vmem:[#allocation7 + $0x28] sm:$0xff]  ;;  %v156_v21 = vld [vmem:[#allocation7 + $0x30] sm:$0xff]  ;;  %v158_v24 = vld [vmem:[#allocation7 + $0x40] sm:$0xff]  ;;  %v436_v40 = vand.u32 2147483647, %v972_v2 }
  0x63   :  { %648 = vmatprep.subr.bf16.mxu1 %v647_v26  ;;  %v623_v23 = vpack.c.bf16 %v157_v22, %v156_v21  ;;  %v159_v25 = vld [vmem:[#allocation7 + $0x48] sm:$0xff]  ;;  %v160_v27 = vld [vmem:[#allocation7 + $0x50] sm:$0xff]  ;;  %v161_v28 = vld [vmem:[#allocation7 + $0x58] sm:$0xff] }
  0x64   :  { %610 = vmatpush3.bf16.msra.mxu0 %v607_v17  ;;  %v154_v17 = vld [vmem:[#allocation7 + $0x20] sm:$0xff]  ;;  %v165_v33 = vld [vmem:[#allocation7 + $0x78] sm:$0xff]  ;;  %v351_v37 = vld [vmem:[#allocation10 + $0x70] sm:$0xff] }
  0x65   :  { %612 = vmatprep.subr.bf16.mxu0 %v992_v20  ;;  %650 = vmatpush3.bf16.msra.mxu1 %v647_v26  ;;  %v619_v19 = vpack.c.bf16 %v155_v18, %v154_v17  ;;  %v627_v26 = vpack.c.bf16 %v159_v25, %v158_v24  ;;  %v162_v30 = vld [vmem:[#allocation7 + $0x60] sm:$0xff] }
  0x66   :  { %124 = vadd.xlane.f32.xlu1 %v123_v11  ;;  %116 = vadd.xlane.f32.xlu0 %v113_v10  ;;  %v153_v10 = vld [vmem:[#allocation7 + $0x18] sm:$0xff] }
  0x67   :  { %652 = vmatprep.subr.bf16.mxu1 %v651_v29  ;;  %v615_v15 = vpack.c.bf16 %v153_v10, %v152_v9 }
  0x69   :  { %654 = vmatpush3.bf16.msra.mxu1 %v651_v29  ;;  %v631_v29 = vpack.c.bf16 %v161_v28, %v160_v27 }
  0x6a   :  { %656 = vmatprep.subr.bf16.mxu1 %v655_v32 }
  0x6d   :  { %658 = vmatpush3.bf16.msra.mxu1 %v655_v32  ;;  %v164_v32 = vld [vmem:[#allocation7 + $0x70] sm:$0xff] }
  0x6e   :  { %660 = vmatprep.subr.bf16.mxu1 %v659_v35  ;;  %v639_v34 = vpack.c.bf16 %v165_v33, %v164_v32 }
  0x71   :  { %662 = vmatpush3.bf16.msra.mxu1 %v659_v35 }
  0x72   :  { %664 = vmatprep.subr.bf16.mxu1 %v663_v38 }
  0x75   :  { %666 = vmatpush3.bf16.msra.mxu1 %v663_v38  ;;  %v352_v38 = vld [vmem:[#allocation10 + $0x78] sm:$0xff] }
  0x76   :  { %668 = vmatprep.subr.bf16.mxu1 %v667_v41  ;;  %v671_v39 = vpack.c.bf16 %v352_v38, %v351_v37 }
  0x79   :  { %670 = vmatpush3.bf16.msra.mxu1 %v667_v41  ;;  %v435_v41 = vand.u32 2147483647, %v976_v3 }
  0x7a   :  { %672 = vmatprep.subr.bf16.mxu1 %v671_v39 }
  0x7d   :  { %674 = vmatpush3.bf16.msra.mxu1 %v671_v39 }
  0xe7   :  { %v102_v42 = vpop.xlane.xlu1 %101  ;;  %v100_v43 = vpop.xlane.xlu0 %99 }
  0xeb   :  { %v109_v44 = vpop.xlane.xlu1 %108  ;;  %v106_v45 = vpop.xlane.xlu0 %105 }
  0xec   :  { %v110_v46 = vadd.f32 %v106_v45, %v100_v43  ;;  %v111_v47 = vadd.f32 %v109_v44, %v102_v42  ;;  %v440_v42 = vsel %vm103_vm0, %v436_v40, 0.0  ;;  %v437_v43 = vsel %vm103_vm0, %v435_v41, 0.0  ;;  %v476_v44 = vld [vmem:[%s1039_s4] ss:$0 sm:$0xff]  ;;  %s838_s4 = smov [#allocation11]  }
  0xed   :  { %441 = vadd.xlane.f32.xlu1 %v440_v42  ;;  %438 = vadd.xlane.f32.xlu0 %v437_v43  ;;  %s460_s18 = sshll.u32 %s838_s4, 4  ;;  %s461_s18 = int_to_ptr.vmem [resolvable:$true] %s460_s18 }
  0xee   :  { %v128_v48 = vmul.f32 0.00625, %v110_v46  ;;  %v995_v52 = vmul.f32 0.00625, %v111_v47  ;;  %p805_p13 = scmp.lt.s32.totalorder %s461_s18, %s461_s18 }
  0xef   :  { %v122_v49 = vpop.xlane.xlu1 %121  ;;  %v115_v50 = vpop.xlane.xlu0 %114 }
  0xf0   :  { %v126_v51 = vadd.f32 %v122_v49, %v115_v50  ;;  %v132_v53 = vmul.f32 %v128_v48, %v128_v48  ;;  %v133_v59 = vmul.f32 %v995_v52, %v995_v52  ;;  %v146_v6 = vsub.f32 %v976_v3, %v128_v48 }
  0xf1   :  { %v147_v11 = vsub.f32 %v972_v2, %v995_v52  ;;  %v142_v13 = vsub.f32 %v970_v1, %v128_v48  ;;  %v143_v35 = vsub.f32 %v968_v0, %v995_v52  ;;  %v837_v52 = vmov 0.0  }
  0xf2   :  { %v130_v54 = vmul.f32 0.00625, %v126_v51  ;;  %v477_v51 = vld [vmem:[%s1041_s6] ss:$0 sm:$0xff]  ;;  %s800_s6 = scalar_lea.vmem %s461_s18, 256 }
  0xf3   :  { %v125_v55 = vpop.xlane.xlu1 %124  ;;  %v117_v56 = vpop.xlane.xlu0 %116  ;;  %p801_p12 = scmp.ne.s32.totalorder %s461_s18, %s800_s6  ;;  %p806_p0 = scmp.lt.s32.totalorder %s800_s6, %s800_s6 }
  0xf4   :  { %v127_v57 = vadd.f32 %v125_v55, %v117_v56  ;;  %v134_v58 = vsub.f32 %v130_v54, %v132_v53 }
  0xf5   :  { %p807_p1 = por %p806_p0, %p805_p13 }
  0xf6   :  { %v131_v60 = vmul.f32 0.00625, %v127_v57  ;;  %v136_v61 = vmax.f32 %v134_v58, 0.0 }
  0xf7   :  { %p808_p2 = pnand %p807_p1, %p801_p12 }
  0xf8   :  { %v135_v62 = vsub.f32 %v131_v60, %v133_v59  ;;  %v138_v63 = vadd.f32 1e-05, %v136_v61 }
  0xfa   :  { %v137_v4 = vmax.f32 %v135_v62, 0.0  ;;  %686 = vrsqrt.f32 %v138_v63 }
  0xfc   :  { %v139_v5 = vadd.f32 1e-05, %v137_v4 }
  0xfe   :  { %688 = vrsqrt.f32 %v139_v5 }
 0x104   :  { %v687_v7 = vpop.eup %686 }
 0x105   :  { %v148_v8 = vmul.f32 %v687_v7, %v146_v6  ;;  %v144_v16 = vmul.f32 %v687_v7, %v142_v13 }
 0x107   :  { %530 = vmatprep.mubr.msk.f32.mxu0 %vm103_vm0, %v148_v8 }
 0x108   :  { %v689_v12 = vpop.eup %688 }
 0x109   :  { %v149_v14 = vmul.f32 %v689_v12, %v147_v11  ;;  %v145_v36 = vmul.f32 %v689_v12, %v143_v35 }
 0x10b   :  { %531 = vmatmul.mubr.msk.f32.vlgmr.msra.gmra.mrb[0].mxu0 %vm103_vm0, %v149_v14 }
 0x10c   :  { %614 = vmatpush3.bf16.msra.mxu0 %v992_v20  ;;  %565 = vmatprep.mubr.f32.mxu0 %v144_v16  ;;  %v163_v20 = vld [vmem:[#allocation7 + $0x68] sm:$0xff] }
 0x10d   :  { %616 = vmatprep.subr.bf16.mxu0 %v615_v15  ;;  %v635_v31 = vpack.c.bf16 %v163_v20, %v162_v30 }
 0x110   :  { %618 = vmatpush3.bf16.msra.mxu0 %v615_v15 }
 0x111   :  { %620 = vmatprep.subr.bf16.mxu0 %v619_v19 }
 0x114   :  { %622 = vmatpush3.bf16.msra.mxu0 %v619_v19 }
 0x115   :  { %624 = vmatprep.subr.bf16.mxu0 %v623_v23 }
 0x118   :  { %626 = vmatpush3.bf16.msra.mxu0 %v623_v23 }
 0x119   :  { %628 = vmatprep.subr.bf16.mxu0 %v627_v26 }
 0x11c   :  { %630 = vmatpush3.bf16.msra.mxu0 %v627_v26 }
 0x11d   :  { %632 = vmatprep.subr.bf16.mxu0 %v631_v29 }
 0x120   :  { %634 = vmatpush3.bf16.msra.mxu0 %v631_v29 }
 0x121   :  { %636 = vmatprep.subr.bf16.mxu0 %v635_v31 }
 0x124   :  { %638 = vmatpush3.bf16.msra.mxu0 %v635_v31 }
 0x125   :  { %640 = vmatprep.subr.bf16.mxu0 %v639_v34 }
 0x128   :  { %642 = vmatpush3.bf16.msra.mxu0 %v639_v34 }
 0x12b   :  { %566 = vmatmul.mubr.f32.vlgmr.msra.gmra.mrb[0].mxu0 %v145_v36 }
 0x17a   :  { %v442_v2 = vpop.xlane.xlu1 %441  ;;  %v439_v3 = vpop.xlane.xlu0 %438 }
 0x17b   :  { %vm444_vm1 = vcmp.ne.f32.partialorder %v442_v2, 0.0  ;;  %vm443_vm2 = vcmp.ne.f32.partialorder %v439_v3, 0.0 }
 0x17c   :  { %v479_v53 = vsel %vm444_vm1, 1.0, %v837_v52  ;;  %v478_v57 = vsel %vm443_vm2, 1.0, %v837_v52 }
 0x1fe   :  { %v567_v45 = vpop.f32.mrb[0].mxu0 }
 0x1ff   :  { %v334_v46 = vadd.f32 %v567_v45, %v476_v44  ;;  %v317_v47 = vpop.f32.mrb[1].mxu0 }
 0x200   :  { %v333_v48 = vadd.f32 %v476_v44, %v317_v47 }
 0x201   :  { %v336_v50 = vmax.f32 %v334_v46, 0.0 }
 0x202   :  { %v335_v49 = vmax.f32 %v333_v48, 0.0 }
 0x204   :  { %600 = vmatprep.mubr.f32.mxu1 %v335_v49 }
 0x205   :  { %601 = vmatmul.mubr.f32.vlgmr.msra.gmra.mrb[0].mxu1 %v336_v50 }
 0x2d8   :  { %v602_v54 = vpop.f32.mrb[0].mxu1 }
 0x2d9   :  { %v432_v55 = vadd.f32 %v602_v54, %v477_v51  ;;  %v426_v56 = vpop.f32.mrb[1].mxu1 }
 0x2da   :  { %v427_v58 = vadd.f32 %v477_v51, %v426_v56 }
 0x2db   :  { %v450_v59 = vmul.f32 %v479_v53, %v432_v55 }
 0x2dc   :  { %v449_v60 = vmul.f32 %v478_v57, %v427_v58 }
 0x2dd   :  { %v452_v61 = vadd.f32 %v450_v59, %v968_v0 }
 0x2de   :  { %v451_v62 = vadd.f32 %v449_v60, %v970_v1 }
 0x2df   :  { %454 = vst [vmem:[#allocation11 + $0x8] sm:$0xff] %v452_v61 }
 0x2e0   :  { %453 = vst [vmem:[#allocation11] sm:$0xff] %v451_v62 }
 0x2e1   :  { %811 = shalt.err (!%p808_p2)
}
 0x2e2   :  { %s812_s21 = scalar_lea.hbm %s1042_s7, 256 }
 0x2e3   :  { %p813_p3 = scmp.ne.s32.totalorder %s1042_s7, %s812_s21  ;;  %p816_p4 = scmp.lt.u32.totalorder %s812_s21, %s1042_s7 }
 0x2e5   :  { %p818_p5 = pnand %p816_p4, %p813_p3 }
 0x2e7   :  { %821 = shalt.err (!%p818_p5)
}
 0x2e8   :  { %466 = dma.vmem_to_hbm [thread:$0]  %s461_s18, 256, %s1042_s7, [#allocation4], %s832_s13, %s832_s13, %s833_s14  }
 0x2e9   :  { %828 = dma.done.wait [#allocation4], 256  }
 0x2ea   :  { %829 = vsyncadd [#allocation4], 4294967040 }
 0x2eb   :  { %470 = vsyncpa [#allocation3], 1 }
 0x2ec   :  { %471 = vsyncpa [#allocation6], 1 }
 0x2ed   :  { %472 = vsyncpa [#allocation9], 1 }
 0x2ee   :  { %473 = vsyncpa [#allocation4], 1 }

// kernel: tpu_custom_call.1
= control target key start
LH: loop header
LB: loop body
LE: loop exit
PB: predicated region body
PF: predicated region fallthrough
CT: control target
= control target key end

     0   :  { %12 = vsyncpa [#allocation3], 0  ;;  %s1035_s0 = inlined_call_operand.hbm [shape: f32[16,128], index: 0, kind: input, shape index: {}]   ;;  %s1036_s1 = inlined_call_operand.hbm [shape: f32[16,32], index: 1, kind: input, shape index: {}]   ;;  %s1037_s2 = inlined_call_operand.hbm [shape: f32[128,128], index: 2, kind: input, shape index: {}]   ;;  %s1038_s3 = inlined_call_operand.hbm [shape: f32[32,128], index: 3, kind: input, shape index: {}]   ;;  %s1039_s4 = inlined_call_operand.vmem [shape: f32[1,128], index: 4, kind: input, shape index: {}]   ;;  %s1040_s5 = inlined_call_operand.hbm [shape: f32[128,128], index: 5, kind: input, shape index: {}]   ;;  %s1041_s6 = inlined_call_operand.vmem [shape: f32[1,128], index: 6, kind: input, shape index: {}]   ;;  %s1042_s7 = inlined_call_operand.hbm [shape: f32[16,128], index: 7, kind: output, shape index: {}]  }
   0x1   :  { %13 = vsyncpa [#allocation6], 0 }
   0x2   :  { %14 = vsyncpa [#allocation9], 0 }
   0x3   :  { %15 = vsyncpa [#allocation4], 0  ;;  %s830_s24 = smov [#allocation5]   ;;  %s831_s26 = smov [#allocation8]  }
   0x4   :  { %s33_s25 = sshll.u32 %s830_s24, 4  ;;  %s57_s27 = sshll.u32 %s831_s26, 4  ;;  %s34_s25 = int_to_ptr.vmem [resolvable:$true] %s33_s25  ;;  %s879_s27 = int_to_ptr.vmem [resolvable:$true] %s57_s27 }
   0x5   :  { %s690_s30 = scalar_lea.hbm %s1036_s1, 256 }
   0x6   :  { %p691_p0 = scmp.ne.s32.totalorder %s1036_s1, %s690_s30  ;;  %p694_p1 = scmp.lt.u32.totalorder %s690_s30, %s1036_s1 }
   0x8   :  { %p696_p2 = pnand %p694_p1, %p691_p0 }
   0xa   :  { %699 = shalt.err (!%p696_p2)
}
   0xb   :  { %s700_s12 = scalar_lea.vmem %s34_s25, 256  ;;  %p705_p4 = scmp.lt.s32.totalorder %s34_s25, %s34_s25 }
   0xc   :  { %p701_p3 = scmp.ne.s32.totalorder %s34_s25, %s700_s12  ;;  %p706_p5 = scmp.lt.s32.totalorder %s700_s12, %s700_s12 }
   0xe   :  { %p707_p6 = por %p706_p5, %p705_p4 }
  0x10   :  { %p708_p7 = pnand %p707_p6, %p701_p3 }
  0x12   :  { %711 = shalt.err (!%p708_p7)
}
  0x13   :  { %s832_s13 = smov 128   ;;  %s833_s14 = smov 8  }
  0x14   :  { %39 = dma.hbm_to_vmem [thread:$0]  %s1036_s1, 256, %s34_s25, [#allocation6], %s832_s13, %s832_s13, %s833_s14  }
  0x15   :  { %s712_s19 = scalar_lea.hbm %s1038_s3, 512 }
  0x16   :  { %p713_p8 = scmp.ne.s32.totalorder %s1038_s3, %s712_s19  ;;  %p716_p9 = scmp.lt.u32.totalorder %s712_s19, %s1038_s3 }
  0x18   :  { %p718_p10 = pnand %p716_p9, %p713_p8 }
  0x1a   :  { %721 = shalt.err (!%p718_p10)
}
  0x1b   :  { %s722_s24 = scalar_lea.vmem %s879_s27, 512  ;;  %p727_p12 = scmp.lt.s32.totalorder %s879_s27, %s879_s27 }
  0x1c   :  { %p723_p11 = scmp.ne.s32.totalorder %s879_s27, %s722_s24  ;;  %p728_p13 = scmp.lt.s32.totalorder %s722_s24, %s722_s24 }
  0x1e   :  { %p729_p0 = por %p728_p13, %p727_p12 }
  0x20   :  { %p730_p1 = pnand %p729_p0, %p723_p11 }
  0x22   :  { %733 = shalt.err (!%p730_p1)
}
  0x23   :  { %63 = dma.hbm_to_vmem [thread:$0]  %s1038_s3, 512, %s879_s27, [#allocation9], %s832_s13, %s832_s13, %s833_s14  }
  0x24   :  { %s834_s26 = smov [#allocation2]   ;;  %s835_s29 = smov [#allocation7]  }
  0x25   :  { %s21_s28 = sshll.u32 %s834_s26, 4  ;;  %s45_s30 = sshll.u32 %s835_s29, 4  ;;  %s22_s28 = int_to_ptr.vmem [resolvable:$true] %s21_s28  ;;  %s916_s30 = int_to_ptr.vmem [resolvable:$true] %s45_s30 }
  0x26   :  { %s734_s10 = scalar_lea.hbm %s1035_s0, 256 }
  0x27   :  { %p735_p2 = scmp.ne.s32.totalorder %s1035_s0, %s734_s10  ;;  %p738_p3 = scmp.lt.u32.totalorder %s734_s10, %s1035_s0 }
  0x29   :  { %p740_p4 = pnand %p738_p3, %p735_p2 }
  0x2b   :  { %743 = shalt.err (!%p740_p4)
}
  0x2c   :  { %s744_s3 = scalar_lea.vmem %s22_s28, 256  ;;  %p749_p6 = scmp.lt.s32.totalorder %s22_s28, %s22_s28 }
  0x2d   :  { %p745_p5 = scmp.ne.s32.totalorder %s22_s28, %s744_s3  ;;  %p750_p7 = scmp.lt.s32.totalorder %s744_s3, %s744_s3 }
  0x2f   :  { %p751_p8 = por %p750_p7, %p749_p6 }
  0x31   :  { %p752_p9 = pnand %p751_p8, %p745_p5 }
  0x33   :  { %755 = shalt.err (!%p752_p9)
}
  0x34   :  { %27 = dma.hbm_to_vmem [thread:$0]  %s1035_s0, 256, %s22_s28, [#allocation3], %s832_s13, %s832_s13, %s833_s14  }
  0x35   :  { %s756_s20 = scalar_lea.hbm %s1037_s2, 2048 }
  0x36   :  { %p757_p10 = scmp.ne.s32.totalorder %s1037_s2, %s756_s20  ;;  %p760_p11 = scmp.lt.u32.totalorder %s756_s20, %s1037_s2 }
  0x38   :  { %p762_p12 = pnand %p760_p11, %p757_p10 }
  0x3a   :  { %765 = shalt.err (!%p762_p12)
}
  0x3b   :  { %s766_s1 = scalar_lea.vmem %s916_s30, 2048  ;;  %p771_p0 = scmp.lt.s32.totalorder %s916_s30, %s916_s30 }
  0x3c   :  { %p767_p13 = scmp.ne.s32.totalorder %s916_s30, %s766_s1  ;;  %p772_p1 = scmp.lt.s32.totalorder %s766_s1, %s766_s1 }
  0x3e   :  { %p773_p2 = por %p772_p1, %p771_p0 }
  0x40   :  { %p774_p3 = pnand %p773_p2, %p767_p13 }
  0x42   :  { %777 = shalt.err (!%p774_p3)
}
  0x43   :  { %51 = dma.hbm_to_vmem [thread:$0]  %s1037_s2, 2048, %s916_s30, [#allocation6], %s832_s13, %s832_s13, %s833_s14  }
  0x44   :  { %s836_s26 = smov [#allocation10]   ;;  %s778_s9 = scalar_lea.hbm %s1040_s5, 2048 }
  0x45   :  { %s71_s28 = sshll.u32 %s836_s26, 4  ;;  %p779_p4 = scmp.ne.s32.totalorder %s1040_s5, %s778_s9  ;;  %s72_s28 = int_to_ptr.vmem [resolvable:$true] %s71_s28 }
  0x46   :  { %p782_p5 = scmp.lt.u32.totalorder %s778_s9, %s1040_s5 }
  0x48   :  { %p784_p6 = pnand %p782_p5, %p779_p4 }
  0x4a   :  { %787 = shalt.err (!%p784_p6)
}
  0x4b   :  { %s788_s16 = scalar_lea.vmem %s72_s28, 2048  ;;  %p793_p8 = scmp.lt.s32.totalorder %s72_s28, %s72_s28 }
  0x4c   :  { %p789_p7 = scmp.ne.s32.totalorder %s72_s28, %s788_s16  ;;  %p794_p9 = scmp.lt.s32.totalorder %s788_s16, %s788_s16 }
  0x4e   :  { %p795_p10 = por %p794_p9, %p793_p8 }
  0x50   :  { %p796_p11 = pnand %p795_p10, %p789_p7 }
  0x52   :  { %799 = shalt.err (!%p796_p11)
}
  0x53   :  { %77 = dma.hbm_to_vmem [thread:$0]  %s1040_s5, 2048, %s72_s28, [#allocation9], %s832_s13, %s832_s13, %s833_s14  }
  0x54   :  { %822 = dma.done.wait [#allocation3], 256  }
  0x55   :  { %823 = vsyncadd [#allocation3], 4294967040 }
  0x56   :  { %824 = dma.done.wait [#allocation6], 2304  }
  0x57   :  { %825 = vsyncadd [#allocation6], 4294964992 }
  0x58   :  { %826 = dma.done.wait [#allocation9], 2560  }
  0x59   :  { %827 = vsyncadd [#allocation9], 4294964736  ;;  %vm103_vm0 = vcmask 261120   ;;  %v968_v0 = vld [vmem:[#allocation2 + $0x8] sm:$0xff]  ;;  %v970_v1 = vld [vmem:[#allocation2] sm:$0xff] }
  0x5a   :  { %v972_v2 = vld [vmem:[#allocation5 + $0x8] sm:$0xff]  ;;  %101 = vadd.xlane.f32.xlu1 %v968_v0  ;;  %99 = vadd.xlane.f32.xlu0 %v970_v1  ;;  %v976_v3 = vld [vmem:[#allocation5] sm:$0xff]  ;;  %v112_v7 = vmul.f32 %v970_v1, %v970_v1  ;;  %v113_v10 = vmul.f32 %v968_v0, %v968_v0  ;;  %v166_v12 = vld [vmem:[#allocation8] sm:$0xff] }
  0x5b   :  { %v107_v4 = vsel %vm103_vm0, %v972_v2, 0.0  ;;  %v104_v5 = vsel %vm103_vm0, %v976_v3, 0.0  ;;  %v118_v6 = vmul.f32 %v976_v3, %v976_v3  ;;  %v119_v9 = vmul.f32 %v972_v2, %v972_v2  ;;  %v167_v13 = vld [vmem:[#allocation8 + $0x8] sm:$0xff]  ;;  %v168_v14 = vld [vmem:[#allocation8 + $0x10] sm:$0xff]  ;;  %v169_v16 = vld [vmem:[#allocation8 + $0x18] sm:$0xff] }
  0x5c   :  { %v603_v15 = vpack.c.bf16 %v167_v13, %v166_v12  ;;  %v607_v17 = vpack.c.bf16 %v169_v16, %v168_v14  ;;  %v150_v18 = vld [vmem:[#allocation7] sm:$0xff]  ;;  %v151_v19 = vld [vmem:[#allocation7 + $0x8] sm:$0xff]  ;;  %v339_v23 = vld [vmem:[#allocation10 + $0x10] sm:$0xff] }
  0x5d   :  { %v120_v8 = vsel %vm103_vm0, %v118_v6, 0.0  ;;  %v123_v11 = vsel %vm103_vm0, %v119_v9, 0.0  ;;  %v992_v20 = vpack.c.bf16 %v151_v19, %v150_v18  ;;  %v337_v21 = vld [vmem:[#allocation10] sm:$0xff]  ;;  %v338_v22 = vld [vmem:[#allocation10 + $0x8] sm:$0xff]  ;;  %v340_v25 = vld [vmem:[#allocation10 + $0x18] sm:$0xff] }
  0x5e   :  { %108 = vadd.xlane.f32.xlu1 %v107_v4  ;;  %105 = vadd.xlane.f32.xlu0 %v104_v5  ;;  %v643_v24 = vpack.c.bf16 %v338_v22, %v337_v21  ;;  %v647_v26 = vpack.c.bf16 %v340_v25, %v339_v23  ;;  %v341_v27 = vld [vmem:[#allocation10 + $0x20] sm:$0xff]  ;;  %v342_v28 = vld [vmem:[#allocation10 + $0x28] sm:$0xff]  ;;  %v343_v30 = vld [vmem:[#allocation10 + $0x30] sm:$0xff] }
  0x5f   :  { %604 = vmatprep.subr.bf16.mxu0 %v603_v15  ;;  %v651_v29 = vpack.c.bf16 %v342_v28, %v341_v27  ;;  %v344_v31 = vld [vmem:[#allocation10 + $0x38] sm:$0xff]  ;;  %v345_v33 = vld [vmem:[#allocation10 + $0x40] sm:$0xff]  ;;  %v346_v34 = vld [vmem:[#allocation10 + $0x48] sm:$0xff] }
  0x60   :  { %606 = vmatpush3.bf16.msra.mxu0 %v603_v15  ;;  %644 = vmatprep.subr.bf16.mxu1 %v643_v24  ;;  %v655_v32 = vpack.c.bf16 %v344_v31, %v343_v30  ;;  %v659_v35 = vpack.c.bf16 %v346_v34, %v345_v33  ;;  %v347_v36 = vld [vmem:[#allocation10 + $0x50] sm:$0xff]  ;;  %v348_v37 = vld [vmem:[#allocation10 + $0x58] sm:$0xff]  ;;  %v349_v39 = vld [vmem:[#allocation10 + $0x60] sm:$0xff] }
  0x61   :  { %608 = vmatprep.subr.bf16.mxu0 %v607_v17  ;;  %646 = vmatpush3.bf16.msra.mxu1 %v643_v24  ;;  %v663_v38 = vpack.c.bf16 %v348_v37, %v347_v36  ;;  %v350_v40 = vld [vmem:[#allocation10 + $0x68] sm:$0xff]  ;;  %v152_v9 = vld [vmem:[#allocation7 + $0x10] sm:$0xff]  ;;  %v157_v22 = vld [vmem:[#allocation7 + $0x38] sm:$0xff] }
  0x62   :  { %121 = vadd.xlane.f32.xlu1 %v120_v8  ;;  %114 = vadd.xlane.f32.xlu0 %v112_v7  ;;  %v667_v41 = vpack.c.bf16 %v350_v40, %v349_v39  ;;  %v155_v18 = vld [vmem:[#allocation7 + $0x28] sm:$0xff]  ;;  %v156_v21 = vld [vmem:[#allocation7 + $0x30] sm:$0xff]  ;;  %v158_v24 = vld [vmem:[#allocation7 + $0x40] sm:$0xff]  ;;  %v436_v40 = vand.u32 2147483647, %v972_v2 }
  0x63   :  { %648 = vmatprep.subr.bf16.mxu1 %v647_v26  ;;  %v623_v23 = vpack.c.bf16 %v157_v22, %v156_v21  ;;  %v159_v25 = vld [vmem:[#allocation7 + $0x48] sm:$0xff]  ;;  %v160_v27 = vld [vmem:[#allocation7 + $0x50] sm:$0xff]  ;;  %v161_v28 = vld [vmem:[#allocation7 + $0x58] sm:$0xff] }
  0x64   :  { %610 = vmatpush3.bf16.msra.mxu0 %v607_v17  ;;  %v154_v17 = vld [vmem:[#allocation7 + $0x20] sm:$0xff]  ;;  %v165_v33 = vld [vmem:[#allocation7 + $0x78] sm:$0xff]  ;;  %v351_v37 = vld [vmem:[#allocation10 + $0x70] sm:$0xff] }
  0x65   :  { %612 = vmatprep.subr.bf16.mxu0 %v992_v20  ;;  %650 = vmatpush3.bf16.msra.mxu1 %v647_v26  ;;  %v619_v19 = vpack.c.bf16 %v155_v18, %v154_v17  ;;  %v627_v26 = vpack.c.bf16 %v159_v25, %v158_v24  ;;  %v162_v30 = vld [vmem:[#allocation7 + $0x60] sm:$0xff] }
  0x66   :  { %124 = vadd.xlane.f32.xlu1 %v123_v11  ;;  %116 = vadd.xlane.f32.xlu0 %v113_v10  ;;  %v153_v10 = vld [vmem:[#allocation7 + $0x18] sm:$0xff] }
  0x67   :  { %652 = vmatprep.subr.bf16.mxu1 %v651_v29  ;;  %v615_v15 = vpack.c.bf16 %v153_v10, %v152_v9 }
  0x69   :  { %654 = vmatpush3.bf16.msra.mxu1 %v651_v29  ;;  %v631_v29 = vpack.c.bf16 %v161_v28, %v160_v27 }
  0x6a   :  { %656 = vmatprep.subr.bf16.mxu1 %v655_v32 }
  0x6d   :  { %658 = vmatpush3.bf16.msra.mxu1 %v655_v32  ;;  %v164_v32 = vld [vmem:[#allocation7 + $0x70] sm:$0xff] }
  0x6e   :  { %660 = vmatprep.subr.bf16.mxu1 %v659_v35  ;;  %v639_v34 = vpack.c.bf16 %v165_v33, %v164_v32 }
  0x71   :  { %662 = vmatpush3.bf16.msra.mxu1 %v659_v35 }
  0x72   :  { %664 = vmatprep.subr.bf16.mxu1 %v663_v38 }
  0x75   :  { %666 = vmatpush3.bf16.msra.mxu1 %v663_v38  ;;  %v352_v38 = vld [vmem:[#allocation10 + $0x78] sm:$0xff] }
  0x76   :  { %668 = vmatprep.subr.bf16.mxu1 %v667_v41  ;;  %v671_v39 = vpack.c.bf16 %v352_v38, %v351_v37 }
  0x79   :  { %670 = vmatpush3.bf16.msra.mxu1 %v667_v41  ;;  %v435_v41 = vand.u32 2147483647, %v976_v3 }
  0x7a   :  { %672 = vmatprep.subr.bf16.mxu1 %v671_v39 }
  0x7d   :  { %674 = vmatpush3.bf16.msra.mxu1 %v671_v39 }
  0xe7   :  { %v102_v42 = vpop.xlane.xlu1 %101  ;;  %v100_v43 = vpop.xlane.xlu0 %99 }
  0xeb   :  { %v109_v44 = vpop.xlane.xlu1 %108  ;;  %v106_v45 = vpop.xlane.xlu0 %105 }
  0xec   :  { %v110_v46 = vadd.f32 %v106_v45, %v100_v43  ;;  %v111_v47 = vadd.f32 %v109_v44, %v102_v42  ;;  %v440_v42 = vsel %vm103_vm0, %v436_v40, 0.0  ;;  %v437_v43 = vsel %vm103_vm0, %v435_v41, 0.0  ;;  %v476_v44 = vld [vmem:[%s1039_s4] ss:$0 sm:$0xff]  ;;  %s838_s4 = smov [#allocation11]  }
  0xed   :  { %441 = vadd.xlane.f32.xlu1 %v440_v42  ;;  %438 = vadd.xlane.f32.xlu0 %v437_v43  ;;  %s460_s18 = sshll.u32 %s838_s4, 4  ;;  %s461_s18 = int_to_ptr.vmem [resolvable:$true] %s460_s18 }
  0xee   :  { %v128_v48 = vmul.f32 0.00625, %v110_v46  ;;  %v995_v52 = vmul.f32 0.00625, %v111_v47  ;;  %p805_p13 = scmp.lt.s32.totalorder %s461_s18, %s461_s18 }
  0xef   :  { %v122_v49 = vpop.xlane.xlu1 %121  ;;  %v115_v50 = vpop.xlane.xlu0 %114 }
  0xf0   :  { %v126_v51 = vadd.f32 %v122_v49, %v115_v50  ;;  %v132_v53 = vmul.f32 %v128_v48, %v128_v48  ;;  %v133_v59 = vmul.f32 %v995_v52, %v995_v52  ;;  %v146_v6 = vsub.f32 %v976_v3, %v128_v48 }
  0xf1   :  { %v147_v11 = vsub.f32 %v972_v2, %v995_v52  ;;  %v142_v13 = vsub.f32 %v970_v1, %v128_v48  ;;  %v143_v35 = vsub.f32 %v968_v0, %v995_v52  ;;  %v837_v52 = vmov 0.0  }
  0xf2   :  { %v130_v54 = vmul.f32 0.00625, %v126_v51  ;;  %v477_v51 = vld [vmem:[%s1041_s6] ss:$0 sm:$0xff]  ;;  %s800_s6 = scalar_lea.vmem %s461_s18, 256 }
  0xf3   :  { %v125_v55 = vpop.xlane.xlu1 %124  ;;  %v117_v56 = vpop.xlane.xlu0 %116  ;;  %p801_p12 = scmp.ne.s32.totalorder %s461_s18, %s800_s6  ;;  %p806_p0 = scmp.lt.s32.totalorder %s800_s6, %s800_s6 }
  0xf4   :  { %v127_v57 = vadd.f32 %v125_v55, %v117_v56  ;;  %v134_v58 = vsub.f32 %v130_v54, %v132_v53 }
  0xf5   :  { %p807_p1 = por %p806_p0, %p805_p13 }
  0xf6   :  { %v131_v60 = vmul.f32 0.00625, %v127_v57  ;;  %v136_v61 = vmax.f32 %v134_v58, 0.0 }
  0xf7   :  { %p808_p2 = pnand %p807_p1, %p801_p12 }
  0xf8   :  { %v135_v62 = vsub.f32 %v131_v60, %v133_v59  ;;  %v138_v63 = vadd.f32 1e-05, %v136_v61 }
  0xfa   :  { %v137_v4 = vmax.f32 %v135_v62, 0.0  ;;  %686 = vrsqrt.f32 %v138_v63 }
  0xfc   :  { %v139_v5 = vadd.f32 1e-05, %v137_v4 }
  0xfe   :  { %688 = vrsqrt.f32 %v139_v5 }
 0x104   :  { %v687_v7 = vpop.eup %686 }
 0x105   :  { %v148_v8 = vmul.f32 %v687_v7, %v146_v6  ;;  %v144_v16 = vmul.f32 %v687_v7, %v142_v13 }
 0x107   :  { %530 = vmatprep.mubr.msk.f32.mxu0 %vm103_vm0, %v148_v8 }
 0x108   :  { %v689_v12 = vpop.eup %688 }
 0x109   :  { %v149_v14 = vmul.f32 %v689_v12, %v147_v11  ;;  %v145_v36 = vmul.f32 %v689_v12, %v143_v35 }
 0x10b   :  { %531 = vmatmul.mubr.msk.f32.vlgmr.msra.gmra.mrb[0].mxu0 %vm103_vm0, %v149_v14 }
 0x10c   :  { %614 = vmatpush3.bf16.msra.mxu0 %v992_v20  ;;  %565 = vmatprep.mubr.f32.mxu0 %v144_v16  ;;  %v163_v20 = vld [vmem:[#allocation7 + $0x68] sm:$0xff] }
 0x10d   :  { %616 = vmatprep.subr.bf16.mxu0 %v615_v15  ;;  %v635_v31 = vpack.c.bf16 %v163_v20, %v162_v30 }
 0x110   :  { %618 = vmatpush3.bf16.msra.mxu0 %v615_v15 }
 0x111   :  { %620 = vmatprep.subr.bf16.mxu0 %v619_v19 }
 0x114   :  { %622 = vmatpush3.bf16.msra.mxu0 %v619_v19 }
 0x115   :  { %624 = vmatprep.subr.bf16.mxu0 %v623_v23 }
 0x118   :  { %626 = vmatpush3.bf16.msra.mxu0 %v623_v23 }
 0x119   :  { %628 = vmatprep.subr.bf16.mxu0 %v627_v26 }
 0x11c   :  { %630 = vmatpush3.bf16.msra.mxu0 %v627_v26 }
 0x11d   :  { %632 = vmatprep.subr.bf16.mxu0 %v631_v29 }
 0x120   :  { %634 = vmatpush3.bf16.msra.mxu0 %v631_v29 }
 0x121   :  { %636 = vmatprep.subr.bf16.mxu0 %v635_v31 }
 0x124   :  { %638 = vmatpush3.bf16.msra.mxu0 %v635_v31 }
 0x125   :  { %640 = vmatprep.subr.bf16.mxu0 %v639_v34 }
 0x128   :  { %642 = vmatpush3.bf16.msra.mxu0 %v639_v34 }
 0x12b   :  { %566 = vmatmul.mubr.f32.vlgmr.msra.gmra.mrb[0].mxu0 %v145_v36 }
 0x17a   :  { %v442_v2 = vpop.xlane.xlu1 %441  ;;  %v439_v3 = vpop.xlane.xlu0 %438 }
 0x17b   :  { %vm444_vm1 = vcmp.ne.f32.partialorder %v442_v2, 0.0  ;;  %vm443_vm2 = vcmp.ne.f32.partialorder %v439_v3, 0.0 }
 0x17c   :  { %v479_v53 = vsel %vm444_vm1, 1.0, %v837_v52  ;;  %v478_v57 = vsel %vm443_vm2, 1.0, %v837_v52 }
 0x1fe   :  { %v567_v45 = vpop.f32.mrb[0].mxu0 }
 0x1ff   :  { %v334_v46 = vadd.f32 %v567_v45, %v476_v44  ;;  %v317_v47 = vpop.f32.mrb[1].mxu0 }
 0x200   :  { %v333_v48 = vadd.f32 %v476_v44, %v317_v47 }
 0x201   :  { %v336_v50 = vmax.f32 %v334_v46, 0.0 }
 0x202   :  { %v335_v49 = vmax.f32 %v333_v48, 0.0 }
 0x204   :  { %600 = vmatprep.mubr.f32.mxu1 %v335_v49 }
 0x205   :  { %601 = vmatmul.mubr.f32.vlgmr.msra.gmra.mrb[0].mxu1 %v336_v50 }
 0x2d8   :  { %v602_v54 = vpop.f32.mrb[0].mxu1 }
 0x2d9   :  { %v432_v55 = vadd.f32 %v602_v54, %v477_v51  ;;  %v426_v56 = vpop.f32.mrb[1].mxu1 }
 0x2da   :  { %v427_v58 = vadd.f32 %v477_v51, %v426_v56 }
 0x2db   :  { %v450_v59 = vmul.f32 %v479_v53, %v432_v55 }
 0x2dc   :  { %v449_v60 = vmul.f32 %v478_v57, %v427_v58 }
 0x2dd   :  { %v452_v61 = vadd.f32 %v450_v59, %v968_v0 }
 0x2de   :  { %v451_v62 = vadd.f32 %v449_v60, %v970_v1 }
 0x2df   :  { %454 = vst [vmem:[#allocation11 + $0x8] sm:$0xff] %v452_v61 }
 0x2e0   :  { %453 = vst [vmem:[#allocation11] sm:$0xff] %v451_v62 }
 0x2e1   :  { %811 = shalt.err (!%p808_p2)
}
 0x2e2   :  { %s812_s21 = scalar_lea.hbm %s1042_s7, 256 }
 0x2e3   :  { %p813_p3 = scmp.ne.s32.totalorder %s1042_s7, %s812_s21  ;;  %p816_p4 = scmp.lt.u32.totalorder %s812_s21, %s1042_s7 }
 0x2e5   :  { %p818_p5 = pnand %p816_p4, %p813_p3 }
 0x2e7   :  { %821 = shalt.err (!%p818_p5)
}
 0x2e8   :  { %466 = dma.vmem_to_hbm [thread:$0]  %s461_s18, 256, %s1042_s7, [#allocation4], %s832_s13, %s832_s13, %s833_s14  }
 0x2e9   :  { %828 = dma.done.wait [#allocation4], 256  }
 0x2ea   :  { %829 = vsyncadd [#allocation4], 4294967040 }
 0x2eb   :  { %470 = vsyncpa [#allocation3], 1 }
 0x2ec   :  { %471 = vsyncpa [#allocation6], 1 }
 0x2ed   :  { %472 = vsyncpa [#allocation9], 1 }
 0x2ee   :  { %473 = vsyncpa [#allocation4], 1 }

</bundles_post_ra>
